<compile_context>
chip_gen: v6e
topology: v6e:2x2x1
jax: 0.10.0
libtpu: 0.0.40
codegen_flags: <defaults>
</compile_context>

<pallas_src>
import jax
import jax.numpy as jnp
from jax.experimental import pallas as pl
from jax.experimental.pallas import tpu as pltpu

IN_FEATURES = 12
OUT_FEATURES = 1


def _round_up(n: int, m: int) -> int:
    return ((n + m - 1) // m) * m


def linear_kernel(x_ref, w_ref, b_ref, o_ref):
    # x_ref: VMEM (tile_r, SPR*12) -- SPR samples packed per row (free reshape of x)
    # w_ref: VMEM (SPR*12, SPR)    -- block-diagonal expansion of the 12-vector weight
    # b_ref: SMEM (1,)             -- bias scalar
    # o_ref: VMEM (tile_r, SPR)    -- lane-dense predictions, sample-major order
    acc = jnp.dot(
        x_ref[...],
        w_ref[...],
        preferred_element_type=jnp.float32,
        precision=jax.lax.Precision.HIGHEST,   # keep true f32 nn.Linear semantics
    )
    o_ref[...] = (acc + b_ref[0]).astype(o_ref.dtype)


def regression_model_forward(x, w, b, *, target_tile_bytes: int = 2 << 20):
    """Pallas equivalent of nn.Linear(12, 1) forward.

    x: (B, 12) f32
    w: (1, 12) f32  (PyTorch layout: (out_features, in_features))
    b: (1,)    f32
    returns: (B, 1) f32
    """
    B, in_f = x.shape
    assert in_f == IN_FEATURES

    w_vec = jnp.asarray(w, x.dtype).reshape(IN_FEATURES)
    b_vec = jnp.asarray(b, jnp.float32).reshape(OUT_FEATURES)

    # Pick samples-per-row (SPR) so the packing reshape of x is a free,
    # contiguous reshape (no HBM pass).  Larger SPR => more lane-dense.
    spr = None
    for s in (128, 64, 32, 16, 8):
        if B % s == 0:
            spr = s
            break
    if spr is None:
        # Rare odd-batch fallback: tiny zero-pad to a multiple of 8.
        spr = 8
        B_p = _round_up(B, 8)
        x_p = jnp.pad(x, ((0, B_p - B), (0, 0)))
    else:
        B_p, x_p = B, x

    nrows = B_p // spr
    rw = spr * IN_FEATURES                      # packed row width (elements)
    x2 = x_p.reshape(nrows, rw)                 # free (row-major contiguous) reshape

    # Block-diagonal weight: W[12*j + k, j] = w[k], zeros elsewhere, so
    # out2[r, j] = sum_k x[r*SPR + j, k] * w[k].
    w_mat = jnp.kron(jnp.eye(spr, dtype=x.dtype), w_vec.reshape(IN_FEATURES, 1))

    # Rows per tile: multiple of 8 (or == nrows), sized ~target_tile_bytes so the
    # per-step pipeline overhead (~0.35us) is amortized against the input DMA.
    row_bytes = rw * jnp.dtype(x.dtype).itemsize
    if nrows <= 8:
        tile_r = nrows
    else:
        cap = max(8, (target_tile_bytes // row_bytes) // 8 * 8)
        tile_r = min(cap, (nrows // 8) * 8)
    grid = (pl.cdiv(nrows, tile_r),)            # boundary block is clipped by Pallas

    out2 = pl.pallas_call(
        linear_kernel,
        out_shape=jax.ShapeDtypeStruct((nrows, spr), x.dtype),
        grid_spec=pltpu.PrefetchScalarGridSpec(
            num_scalar_prefetch=0,
            grid=grid,
            in_specs=[
                pl.BlockSpec((tile_r, rw), lambda i: (i, 0)),
                pl.BlockSpec((rw, spr), lambda i: (0, 0)),   # resident, fetched once
                pl.BlockSpec(memory_space=pltpu.MemorySpace.SMEM),
            ],
            out_specs=pl.BlockSpec((tile_r, spr), lambda i: (i, 0)),
        ),
        compiler_params=pltpu.CompilerParams(
            dimension_semantics=("parallel",),
        ),
        cost_estimate=pl.CostEstimate(
            flops=2 * nrows * rw * spr,
            transcendentals=0,
            bytes_accessed=(nrows * rw + rw * spr + nrows * spr + 1) * 4,
        ),
    )(x2, w_mat, b_vec)

    # Sample-major flatten back to the PyTorch (B, 1) convention (free reshape).
    out = out2.reshape(B_p, OUT_FEATURES)
    if B_p != B:
        out = out[:B]
    return out


if __name__ == "__main__":
    key = jax.random.PRNGKey(0)
    kx, kw, kb = jax.random.split(key, 3)

    B = 8
    # nn.Linear(12, 1) parameters in PyTorch layout.
    w_torch = jax.random.normal(kw, (OUT_FEATURES, IN_FEATURES), jnp.float32) * 0.1
    b_torch = jax.random.normal(kb, (OUT_FEATURES,), jnp.float32) * 0.1
    x = jax.random.normal(kx, (B, IN_FEATURES), jnp.float32)

    fwd = jax.jit(regression_model_forward)
    out = jax.block_until_ready(fwd(x, w_torch, b_torch))

    # Pure-f32 elementwise reference (avoids matmul-precision ambiguity).
    ref = jnp.sum(x * w_torch.reshape(1, IN_FEATURES), axis=1, keepdims=True) + b_torch
    assert out.shape == (B, OUT_FEATURES)
    assert jnp.allclose(out, ref, atol=1e-5, rtol=1e-5)

    print("KERNEL_OK")
</pallas_src>

<mosaic_0001>
module attributes {stable_mosaic.version = 11 : i64} {
  func.func @linear_kernel(%arg0: i32, %arg1: memref<1x96xf32, #tpu.memory_space<vmem>>, %arg2: memref<96x8xf32, #tpu.memory_space<vmem>>, %arg3: memref<1xf32, #tpu.memory_space<smem>>, %arg4: memref<1x8xf32, #tpu.memory_space<vmem>>) attributes {dimension_semantics = [#tpu.dimension_semantics<parallel>], iteration_bounds = array<i64: 1>, scalar_prefetch = 0 : i64, scratch_operands = 0 : i64, tpu.core_type = #tpu.core_type<tc>, window_params = [{transform_indices = @transform_0, window_bounds = array<i64: 1, 96>}, {pipeline_mode = #tpu.pipeline_mode<synchronous>, transform_indices = @transform_1, window_bounds = array<i64: 96, 8>}, {transform_indices = @transform_2, window_bounds = array<i64: 1>}, {transform_indices = @transform_3, window_bounds = array<i64: 1, 8>}]} {
    %c0 = arith.constant 0 : index
    %c0_0 = arith.constant 0 : index
    %0 = vector.load %arg1[%c0, %c0_0] : memref<1x96xf32, #tpu.memory_space<vmem>>, vector<1x96xf32>
    %c0_1 = arith.constant 0 : index
    %c0_2 = arith.constant 0 : index
    %1 = vector.load %arg2[%c0_1, %c0_2] : memref<96x8xf32, #tpu.memory_space<vmem>>, vector<96x8xf32>
    %cst = arith.constant dense<0.000000e+00> : vector<1x8xf32>
    %2 = tpu.matmul %0, %1, %cst {dimension_numbers = #tpu.dot_dimension_numbers<[1], [0], [0], [1], [0, 0, 1, 1], [], []>, precision = #tpu.contract_precision<fp32>} : vector<1x96xf32>, vector<96x8xf32>, vector<1x8xf32> -> vector<1x8xf32>
    %c0_3 = arith.constant 0 : index
    %3 = memref.load %arg3[%c0_3] : memref<1xf32, #tpu.memory_space<smem>>
    %4 = vector.broadcast %3 : f32 to vector<1x8xf32>
    %5 = arith.addf %2, %4 : vector<1x8xf32>
    %c0_4 = arith.constant 0 : index
    %c0_5 = arith.constant 0 : index
    %6 = vector.load %arg4[%c0_4, %c0_5] : memref<1x8xf32, #tpu.memory_space<vmem>>, vector<1x8xf32>
    tpu.vector_store %arg4[%c0_4, %c0_5], %5 {strides = array<i32>} : memref<1x8xf32, #tpu.memory_space<vmem>>, vector<1x8xf32>,
    return
  }
  func.func @transform_0(%arg0: i32) -> (i32, i32) {
    %c0_i32 = arith.constant 0 : i32
    %c0_i32_0 = arith.constant 0 : i32
    return %arg0, %c0_i32 : i32, i32
  }
  func.func @transform_1(%arg0: i32) -> (i32, i32) {
    %c0_i32 = arith.constant 0 : i32
    %c0_i32_0 = arith.constant 0 : i32
    %c0_i32_1 = arith.constant 0 : i32
    return %c0_i32, %c0_i32_0 : i32, i32
  }
  func.func @transform_2(%arg0: i32) -> i32 {
    %c0_i32 = arith.constant 0 : i32
    %c0_i32_0 = arith.constant 0 : i32
    return %c0_i32 : i32
  }
  func.func @transform_3(%arg0: i32) -> (i32, i32) {
    %c0_i32 = arith.constant 0 : i32
    %c0_i32_0 = arith.constant 0 : i32
    return %arg0, %c0_i32 : i32, i32
  }
}

</mosaic_0001>

<bundles_post_ra>
// kernel: regression_model_forward.1
= control target key start
LH: loop header
LB: loop body
LE: loop exit
PB: predicated region body
PF: predicated region fallthrough
CT: control target
= control target key end

     0   :  { %v905_v3 = vmov 0.0   ;;  %vm906_vm0 = vmmov 0   ;;  %s1252_s0 = inlined_call_operand.vmem [shape: f32[1,96], index: 0, kind: input, shape index: {}]   ;;  %s1253_s1 = inlined_call_operand.vmem [shape: f32[96,8], index: 1, kind: input, shape index: {}]   ;;  %s1254_s2 = inlined_call_operand.<no memory space> [shape: f32[1], index: 2, kind: input, shape index: {}]   ;;  %s1255_s3 = inlined_call_operand.hbm [shape: f32[1,8], index: 3, kind: output, shape index: {}]  }
   0x1   :  { %v28_v0 = vld [vmem:[%s1253_s1 + $0x58] sm:$0xff]  ;;  %v27_v1 = vld [vmem:[%s1253_s1 + $0x50] sm:$0xff]  ;;  %v26_v2 = vld [vmem:[%s1253_s1 + $0x48] sm:$0xff]  ;;  %718 = vmatprep.subr.mxu0 %v905_v3  ;;  %745 = vmatprep.subr.mxu1 %v905_v3 }
   0x2   :  { %v938_v4 = vand.u32 4294901760, %v28_v0  ;;  %v940_v5 = vand.u32 4294901760, %v27_v1  ;;  %v942_v6 = vand.u32 4294901760, %v26_v2  ;;  %v25_v7 = vld [vmem:[%s1253_s1 + $0x40] sm:$0xff]  ;;  %v24_v8 = vld [vmem:[%s1253_s1 + $0x38] sm:$0xff]  ;;  %v23_v9 = vld [vmem:[%s1253_s1 + $0x30] sm:$0xff]  ;;  %742 = vmatprep.mubr.msk.f32.mxu0 %vm906_vm0, %v905_v3  ;;  %769 = vmatprep.mubr.msk.f32.mxu1 %vm906_vm0, %v905_v3 }
   0x3   :  { %v954_v10 = vand.u32 4294901760, %v25_v7  ;;  %v956_v11 = vand.u32 4294901760, %v24_v8  ;;  %v958_v12 = vand.u32 4294901760, %v23_v9  ;;  %v22_v13 = vld [vmem:[%s1253_s1 + $0x28] sm:$0xff]  ;;  %v21_v14 = vld [vmem:[%s1253_s1 + $0x20] sm:$0xff]  ;;  %v20_v19 = vld [vmem:[%s1253_s1 + $0x18] sm:$0xff] }
   0x4   :  { %719 = vmatpush3.msra.mxu0 %v938_v4  ;;  %v972_v15 = vsub.f32 %v28_v0, %v938_v4  ;;  %v975_v16 = vsub.f32 %v27_v1, %v940_v5  ;;  %v977_v17 = vand.u32 4294901760, %v22_v13  ;;  %v980_v18 = vsub.f32 %v26_v2, %v942_v6 }
   0x5   :  { %720 = vmatprep.subr.mxu0 %v905_v3  ;;  %v987_v20 = vsub.f32 %v25_v7, %v954_v10  ;;  %v990_v21 = vsub.f32 %v24_v8, %v956_v11 }
   0x6   :  { %9 = vsyncpa [#allocation4], 0  ;;  %721 = vmatpush3.msra.mxu0 %v940_v5  ;;  %v133_v22 = vand.u32 4294901760, %v972_v15  ;;  %v140_v23 = vand.u32 4294901760, %v975_v16  ;;  %v147_v24 = vand.u32 4294901760, %v980_v18  ;;  %v996_v25 = vand.u32 4294901760, %v21_v14 }
   0x7   :  { %v19_v26 = vld [vmem:[%s1253_s1 + $0x10] sm:$0xff]  ;;  %722 = vmatprep.subr.mxu0 %v905_v3  ;;  %v154_v27 = vand.u32 4294901760, %v987_v20  ;;  %v1003_v28 = vand.u32 4294901760, %v20_v19  ;;  %v161_v29 = vand.u32 4294901760, %v990_v21  ;;  %v1007_v30 = vsub.f32 %v23_v9, %v958_v12  ;;  %v18_v34 = vld [vmem:[%s1253_s1 + $0x8] sm:$0xff]  ;;  %v17_v42 = vld [vmem:[%s1253_s1] sm:$0xff] }
   0x8   :  { %723 = vmatpush3.msra.mxu0 %v942_v6  ;;  %v134_v31 = vsub.f32 %v972_v15, %v133_v22  ;;  %v141_v32 = vsub.f32 %v975_v16, %v140_v23  ;;  %v148_v33 = vsub.f32 %v980_v18, %v147_v24  ;;  %v1023_v35 = vsub.f32 %v22_v13, %v977_v17  ;;  %v16_v37 = vld [vmem:[%s1252_s0] sm:$0x1]  ;;  %s907_s11 = smov [#allocation3]  }
   0x9   :  { %724 = vmatprep.subr.mxu0 %v905_v3  ;;  %v1026_v36 = vand.u32 4294901760, %v19_v26  ;;  %vm31_vm1 = vcmask 785408   ;;  %v155_v40 = vsub.f32 %v987_v20, %v154_v27  ;;  %v168_v41 = vand.u32 4294901760, %v1007_v30  ;;  %s632_s12 = sshll.u32 %s907_s11, 4  ;;  %s633_s12 = int_to_ptr.vmem [resolvable:$true] %s632_s12 }
   0xa   :  { %725 = vmatpush3.msra.mxu0 %v954_v10  ;;  %v135_v38 = vand.u32 4294901760, %v134_v31  ;;  %v142_v39 = vand.u32 4294901760, %v141_v32  ;;  %v162_v43 = vsub.f32 %v990_v21, %v161_v29  ;;  %v1043_v44 = vand.u32 4294901760, %v18_v34  ;;  %s883_s13 = scalar_lea.vmem %s633_s12, 16  ;;  %s887_s14 = scalar_lea.vmem %s633_s12, 32 }
   0xb   :  { %726 = vmatprep.subr.mxu0 %v905_v3  ;;  %v1046_v45 = vsub.f32 %v21_v14, %v996_v25  ;;  %v149_v46 = vand.u32 4294901760, %v148_v33  ;;  %v175_v47 = vand.u32 4294901760, %v1023_v35  ;;  %v33_v48 = vsel %vm31_vm1, %v16_v37, 0  ;;  %p884_p0 = scmp.ne.s32.totalorder %s633_s12, %s883_s13  ;;  %p888_p1 = scmp.lt.s32.totalorder %s633_s12, %s633_s12 }
   0xc   :  { %727 = vmatpush3.msra.mxu0 %v956_v11  ;;  %746 = vmatpush3.msra.mxu1 %v135_v38  ;;  %v1051_v49 = vsub.f32 %v20_v19, %v1003_v28  ;;  %v1055_v50 = vand.u32 4294901760, %v17_v42  ;;  %v1057_v51 = vand.u32 4294901760, %v33_v48  ;;  %v156_v52 = vand.u32 4294901760, %v155_v40  ;;  %p889_p2 = scmp.lt.s32.totalorder %s887_s14, %s883_s13 }
   0xd   :  { %728 = vmatprep.subr.mxu0 %v905_v3  ;;  %747 = vmatprep.subr.mxu1 %v905_v3  ;;  %v169_v53 = vsub.f32 %v1007_v30, %v168_v41  ;;  %v182_v54 = vand.u32 4294901760, %v1046_v45  ;;  %v1065_v55 = vsub.f32 %v19_v26, %v1026_v36  ;;  %v163_v57 = vand.u32 4294901760, %v162_v43 }
   0xe   :  { %729 = vmatpush3.msra.mxu0 %v958_v12  ;;  %748 = vmatpush3.msra.mxu1 %v142_v39  ;;  %v1070_v56 = vsub.f32 %v33_v48, %v1057_v51  ;;  %v176_v58 = vsub.f32 %v1023_v35, %v175_v47  ;;  %v189_v59 = vand.u32 4294901760, %v1051_v49  ;;  %v1078_v60 = vsub.f32 %v18_v34, %v1043_v44  ;;  %p890_p3 = por %p889_p2, %p888_p1 }
   0xf   :  { %730 = vmatprep.subr.mxu0 %v905_v3  ;;  %749 = vmatprep.subr.mxu1 %v905_v3  ;;  %v170_v62 = vand.u32 4294901760, %v169_v53  ;;  %v183_v63 = vsub.f32 %v1046_v45, %v182_v54  ;;  %v196_v0 = vand.u32 4294901760, %v1065_v55  ;;  %v1089_v1 = vsub.f32 %v17_v42, %v1055_v50 }
  0x10   :  { %731 = vmatpush3.msra.mxu0 %v977_v17  ;;  %750 = vmatpush3.msra.mxu1 %v149_v46  ;;  %v114_v61 = vand.u32 4294901760, %v1070_v56  ;;  %v177_v2 = vand.u32 4294901760, %v176_v58  ;;  %v190_v8 = vsub.f32 %v1051_v49, %v189_v59  ;;  %v203_v9 = vand.u32 4294901760, %v1078_v60  ;;  %p891_p4 = pnand %p890_p3, %p884_p0 }
  0x11   :  { %732 = vmatprep.subr.mxu0 %v905_v3  ;;  %751 = vmatprep.subr.mxu1 %v905_v3  ;;  %v184_v13 = vand.u32 4294901760, %v183_v63  ;;  %v197_v14 = vsub.f32 %v1065_v55, %v196_v0  ;;  %v210_v19 = vand.u32 4294901760, %v1089_v1  ;;  %vm624_vm2 = vcmask 57344  }
  0x12   :  { %733 = vmatpush3.msra.mxu0 %v996_v25  ;;  %752 = vmatpush3.msra.mxu1 %v156_v52  ;;  %v115_v7 = vsub.f32 %v1070_v56, %v114_v61  ;;  %v191_v31 = vand.u32 4294901760, %v190_v8  ;;  %v204_v32 = vsub.f32 %v1078_v60, %v203_v9 }
  0x13   :  { %734 = vmatprep.subr.mxu0 %v905_v3  ;;  %753 = vmatprep.subr.mxu1 %v905_v3  ;;  %v198_v33 = vand.u32 4294901760, %v197_v14  ;;  %v211_v34 = vsub.f32 %v1089_v1, %v210_v19 }
  0x14   :  { %735 = vmatpush3.msra.mxu0 %v1003_v28  ;;  %754 = vmatpush3.msra.mxu1 %v163_v57  ;;  %v116_v26 = vand.u32 4294901760, %v115_v7  ;;  %v205_v37 = vand.u32 4294901760, %v204_v32 }
  0x15   :  { %736 = vmatprep.subr.mxu0 %v905_v3  ;;  %755 = vmatprep.subr.mxu1 %v905_v3  ;;  %v212_v38 = vand.u32 4294901760, %v211_v34 }
  0x16   :  { %737 = vmatpush3.msra.mxu0 %v1026_v36  ;;  %756 = vmatpush3.msra.mxu1 %v170_v62 }
  0x17   :  { %738 = vmatprep.subr.mxu0 %v905_v3  ;;  %757 = vmatprep.subr.mxu1 %v905_v3 }
  0x18   :  { %739 = vmatpush3.msra.mxu0 %v1043_v44  ;;  %758 = vmatpush3.msra.mxu1 %v177_v2 }
  0x19   :  { %740 = vmatprep.subr.mxu0 %v905_v3  ;;  %759 = vmatprep.subr.mxu1 %v905_v3 }
  0x1a   :  { %741 = vmatpush3.msra.mxu0 %v1055_v50  ;;  %760 = vmatpush3.msra.mxu1 %v184_v13 }
  0x1b   :  { %761 = vmatprep.subr.mxu1 %v905_v3  ;;  %772 = vmatprep.subr.mxu0 %v905_v3 }
  0x1c   :  { %743 = vmatmul.mubr.f32.vlgmr.msra.gmra.mxu0 %v116_v26  ;;  %762 = vmatpush3.msra.mxu1 %v191_v31 }
  0x1d   :  { %773 = vmatpush3.msra.mxu0 %v972_v15  ;;  %763 = vmatprep.subr.mxu1 %v905_v3 }
  0x1e   :  { %774 = vmatprep.subr.mxu0 %v905_v3  ;;  %764 = vmatpush3.msra.mxu1 %v198_v33 }
  0x1f   :  { %775 = vmatpush3.msra.mxu0 %v975_v16  ;;  %765 = vmatprep.subr.mxu1 %v905_v3 }
  0x20   :  { %776 = vmatprep.subr.mxu0 %v905_v3  ;;  %766 = vmatpush3.msra.mxu1 %v205_v37 }
  0x21   :  { %777 = vmatpush3.msra.mxu0 %v980_v18  ;;  %767 = vmatprep.subr.mxu1 %v905_v3 }
  0x22   :  { %778 = vmatprep.subr.mxu0 %v905_v3  ;;  %768 = vmatpush3.msra.mxu1 %v212_v38 }
  0x23   :  { %779 = vmatpush3.msra.mxu0 %v987_v20  ;;  %770 = vmatmul.mubr.f32.vlgmr.msra.gmra.mxu1 %v1057_v51 }
  0x24   :  { %780 = vmatprep.subr.mxu0 %v905_v3  ;;  %799 = vmatprep.subr.mxu1 %v905_v3 }
  0x25   :  { %781 = vmatpush3.msra.mxu0 %v990_v21  ;;  %800 = vmatpush3.msra.mxu1 %v938_v4 }
  0x26   :  { %782 = vmatprep.subr.mxu0 %v905_v3  ;;  %801 = vmatprep.subr.mxu1 %v905_v3 }
  0x27   :  { %783 = vmatpush3.msra.mxu0 %v1007_v30  ;;  %802 = vmatpush3.msra.mxu1 %v940_v5 }
  0x28   :  { %784 = vmatprep.subr.mxu0 %v905_v3  ;;  %803 = vmatprep.subr.mxu1 %v905_v3 }
  0x29   :  { %785 = vmatpush3.msra.mxu0 %v1023_v35  ;;  %804 = vmatpush3.msra.mxu1 %v942_v6 }
  0x2a   :  { %786 = vmatprep.subr.mxu0 %v905_v3  ;;  %805 = vmatprep.subr.mxu1 %v905_v3 }
  0x2b   :  { %787 = vmatpush3.msra.mxu0 %v1046_v45  ;;  %806 = vmatpush3.msra.mxu1 %v954_v10 }
  0x2c   :  { %788 = vmatprep.subr.mxu0 %v905_v3  ;;  %807 = vmatprep.subr.mxu1 %v905_v3 }
  0x2d   :  { %789 = vmatpush3.msra.mxu0 %v1051_v49  ;;  %808 = vmatpush3.msra.mxu1 %v956_v11 }
  0x2e   :  { %790 = vmatprep.subr.mxu0 %v905_v3  ;;  %809 = vmatprep.subr.mxu1 %v905_v3 }
  0x2f   :  { %791 = vmatpush3.msra.mxu0 %v1065_v55  ;;  %810 = vmatpush3.msra.mxu1 %v958_v12 }
  0x30   :  { %792 = vmatprep.subr.mxu0 %v905_v3  ;;  %811 = vmatprep.subr.mxu1 %v905_v3 }
  0x31   :  { %793 = vmatpush3.msra.mxu0 %v1078_v60  ;;  %812 = vmatpush3.msra.mxu1 %v977_v17 }
  0x32   :  { %794 = vmatprep.subr.mxu0 %v905_v3  ;;  %813 = vmatprep.subr.mxu1 %v905_v3 }
  0x33   :  { %795 = vmatpush3.msra.mxu0 %v1089_v1  ;;  %796 = vmatprep.mubr.msk.f32.mxu0 %vm906_vm0, %v905_v3 }
  0x34   :  { %814 = vmatpush3.msra.mxu1 %v996_v25  ;;  %797 = vmatmul.mubr.f32.vlgmr.msra.gmra.mxu0 %v1070_v56 }
  0x35   :  { %815 = vmatprep.subr.mxu1 %v905_v3  ;;  %826 = vmatprep.subr.mxu0 %v905_v3 }
  0x36   :  { %816 = vmatpush3.msra.mxu1 %v1003_v28  ;;  %827 = vmatpush3.msra.mxu0 %v133_v22 }
  0x37   :  { %817 = vmatprep.subr.mxu1 %v905_v3  ;;  %828 = vmatprep.subr.mxu0 %v905_v3 }
  0x38   :  { %818 = vmatpush3.msra.mxu1 %v1026_v36  ;;  %829 = vmatpush3.msra.mxu0 %v140_v23 }
  0x39   :  { %819 = vmatprep.subr.mxu1 %v905_v3  ;;  %830 = vmatprep.subr.mxu0 %v905_v3 }
  0x3a   :  { %820 = vmatpush3.msra.mxu1 %v1043_v44  ;;  %831 = vmatpush3.msra.mxu0 %v147_v24 }
  0x3b   :  { %821 = vmatprep.subr.mxu1 %v905_v3  ;;  %832 = vmatprep.subr.mxu0 %v905_v3 }
  0x3c   :  { %822 = vmatpush3.msra.mxu1 %v1055_v50  ;;  %823 = vmatprep.mubr.msk.f32.mxu1 %vm906_vm0, %v905_v3 }
  0x3d   :  { %833 = vmatpush3.msra.mxu0 %v154_v27  ;;  %824 = vmatmul.mubr.f32.vlgmr.msra.gmra.mxu1 %v114_v61 }
  0x3e   :  { %834 = vmatprep.subr.mxu0 %v905_v3  ;;  %853 = vmatprep.subr.mxu1 %v905_v3 }
  0x3f   :  { %835 = vmatpush3.msra.mxu0 %v161_v29  ;;  %854 = vmatpush3.msra.mxu1 %v938_v4 }
  0x40   :  { %836 = vmatprep.subr.mxu0 %v905_v3  ;;  %855 = vmatprep.subr.mxu1 %v905_v3 }
  0x41   :  { %837 = vmatpush3.msra.mxu0 %v168_v41  ;;  %856 = vmatpush3.msra.mxu1 %v940_v5 }
  0x42   :  { %838 = vmatprep.subr.mxu0 %v905_v3  ;;  %857 = vmatprep.subr.mxu1 %v905_v3 }
  0x43   :  { %839 = vmatpush3.msra.mxu0 %v175_v47  ;;  %858 = vmatpush3.msra.mxu1 %v942_v6 }
  0x44   :  { %840 = vmatprep.subr.mxu0 %v905_v3  ;;  %859 = vmatprep.subr.mxu1 %v905_v3 }
  0x45   :  { %841 = vmatpush3.msra.mxu0 %v182_v54  ;;  %860 = vmatpush3.msra.mxu1 %v954_v10 }
  0x46   :  { %842 = vmatprep.subr.mxu0 %v905_v3  ;;  %861 = vmatprep.subr.mxu1 %v905_v3 }
  0x47   :  { %843 = vmatpush3.msra.mxu0 %v189_v59  ;;  %862 = vmatpush3.msra.mxu1 %v956_v11 }
  0x48   :  { %844 = vmatprep.subr.mxu0 %v905_v3  ;;  %863 = vmatprep.subr.mxu1 %v905_v3 }
  0x49   :  { %845 = vmatpush3.msra.mxu0 %v196_v0  ;;  %864 = vmatpush3.msra.mxu1 %v958_v12 }
  0x4a   :  { %846 = vmatprep.subr.mxu0 %v905_v3  ;;  %865 = vmatprep.subr.mxu1 %v905_v3 }
  0x4b   :  { %847 = vmatpush3.msra.mxu0 %v203_v9  ;;  %866 = vmatpush3.msra.mxu1 %v977_v17  ;;  %v30_v17 = vstv %s1254_s2 }
  0x4c   :  { %848 = vmatprep.subr.mxu0 %v905_v3  ;;  %867 = vmatprep.subr.mxu1 %v905_v3 }
  0x4d   :  { %849 = vmatpush3.msra.mxu0 %v210_v19  ;;  %850 = vmatprep.mubr.msk.f32.mxu0 %vm906_vm0, %v905_v3 }
  0x4e   :  { %868 = vmatpush3.msra.mxu1 %v996_v25  ;;  %851 = vmatmul.mubr.f32.vlgmr.msra.gmra.mxu0 %v1057_v51 }
  0x4f   :  { %869 = vmatprep.subr.mxu1 %v905_v3  ;;  %877 = vmatprep.mubr.msk.f32.mxu1 %vm906_vm0, %v905_v3 }
  0x50   :  { %870 = vmatpush3.msra.mxu1 %v1003_v28 }
  0x51   :  { %871 = vmatprep.subr.mxu1 %v905_v3 }
  0x52   :  { %872 = vmatpush3.msra.mxu1 %v1026_v36 }
  0x53   :  { %873 = vmatprep.subr.mxu1 %v905_v3 }
  0x54   :  { %874 = vmatpush3.msra.mxu1 %v1043_v44 }
  0x55   :  { %875 = vmatprep.subr.mxu1 %v905_v3 }
  0x56   :  { %876 = vmatpush3.msra.mxu1 %v1055_v50 }
  0x57   :  { %878 = vmatmul.mubr.f32.vlgmr.msra.gmra.mxu1 %v1057_v51 }
  0xdc   :  { %v118_v4 = vpop.f32.mrf.mxu0 }
  0xdd   :  { %v119_v18 = vadd.f32 %v118_v4, %v30_v17 }
  0xde   :  { %v744_v5 = vpop.f32.mrf.mxu0 }
  0xe3   :  { %v249_v6 = vpop.f32.mrf.mxu1 }
  0xe4   :  { %v250_v21 = vadd.f32 %v249_v6, %v119_v18 }
  0xe5   :  { %v771_v10 = vpop.f32.mrf.mxu1 }
  0xf4   :  { %v345_v11 = vpop.f32.mrf.mxu0 }
  0xf5   :  { %v346_v22 = vadd.f32 %v345_v11, %v250_v21 }
  0xf6   :  { %v798_v12 = vpop.f32.mrf.mxu0 }
  0xfd   :  { %v430_v15 = vpop.f32.mrf.mxu1 }
  0xfe   :  { %v431_v23 = vadd.f32 %v430_v15, %v346_v22 }
  0xff   :  { %v825_v16 = vpop.f32.mrf.mxu1 }
 0x10e   :  { %v537_v20 = vpop.f32.mrf.mxu0 }
 0x10f   :  { %v538_v24 = vadd.f32 %v537_v20, %v431_v23 }
 0x110   :  { %v852_v3 = vpop.f32.mrf.mxu0 }
 0x117   :  { %v620_v25 = vpop.f32.mrf.mxu1 }
 0x118   :  { %v621_v27 = vadd.f32 %v620_v25, %v538_v24 }
 0x119   :  { %v879_v28 = vpop.f32.mrf.mxu1 }
 0x11a   :  { %625 = vst.msk [vmem:[#allocation3] sm:$0x1] %vm624_vm2, %v621_v27 }
 0x11b   :  { %894 = shalt.err (!%p891_p4)
}
 0x11c   :  { %635 = dma.vmem_to_hbm [thread:$0]  %s633_s12, 16, %s1255_s3, [#allocation4]  }
 0x11d   :  { %903 = dma.done.wait [#allocation4], 16  }
 0x11e   :  { %904 = vsyncadd [#allocation4], 4294967280 }
 0x11f   :  { %639 = vsyncpa [#allocation4], 1 }

</bundles_post_ra>
